<compile_context>
chip_gen: v5e
topology: v5e:2x2
jax: 0.10.0
libtpu: 0.0.40
codegen_flags: <defaults>
</compile_context>

<pallas_src>
import jax
import jax.numpy as jnp
from jax.experimental import pallas as pl
from jax.experimental.pallas import tpu as pltpu


def pose_loss_kernel(sx_ref, sq_ref, px_ref, pq_ref, tx_ref, tq_ref, out_ref):
    px = px_ref[...]          # (B, 3) f32
    pq = pq_ref[...]          # (B, 4) f32
    tx = tx_ref[...]          # (B, 3) f32
    tq = tq_ref[...]          # (B, 4) f32
    b = px.shape[0]

    # --- quaternion L2 normalization (torch F.normalize, p=2, dim=1, eps=1e-12)
    # clamp the squared norm at eps^2 so rsqrt reproduces x / max(||x||, eps)
    sumsq = jnp.sum(pq * pq, axis=1, keepdims=True)
    inv_norm = jax.lax.rsqrt(jnp.maximum(sumsq, 1e-24))   # EUP rsqrt, no VPU divide
    qn = pq * inv_norm

    # --- L1 losses with mean reduction (F.l1_loss default); mean = sum * (1/N)
    loss_x = jnp.sum(jnp.abs(px - tx)) * (1.0 / (b * 3))
    loss_q = jnp.sum(jnp.abs(qn - tq)) * (1.0 / (b * 4))

    sx = sx_ref[0]
    sq = sq_ref[0]

    # --- homoscedastic-uncertainty weighted combination
    # Fuse the two exponentials into a single EUP exp on a 2-wide lane vector:
    # loss = sum_i( exp(-s_i) * l_i + s_i ),  s = [sx, sq], l = [loss_x, loss_q]
    lane = jax.lax.broadcasted_iota(jnp.int32, (1, 2), 1)
    s_vec = jnp.where(lane == 0, sx, sq)            # (1, 2) = [sx, sq]
    l_vec = jnp.where(lane == 0, loss_x, loss_q)    # (1, 2) = [loss_x, loss_q]
    loss = jnp.sum(jnp.exp(-s_vec) * l_vec + s_vec)

    out_ref[0] = loss
    out_ref[1] = loss_x
    out_ref[2] = loss_q


def pose_loss_pallas(pred_x, pred_q, target_x, target_q, sx, sq):
    """Returns (loss, loss_x, loss_q) as float32 device scalars.

    Matches pose_loss.forward semantics; loss_x/loss_q are returned as device
    scalars (torch's .item() host sync has no in-kernel equivalent).
    """
    f32 = jnp.float32
    vmem = pl.BlockSpec(memory_space=pltpu.MemorySpace.VMEM)
    smem = pl.BlockSpec(memory_space=pltpu.MemorySpace.SMEM)

    # Gridless single step: ~512 B of operands, fixed-overhead bound on every
    # generation; a grid / deeper buffering / MXU path would be pure overhead.
    out = pl.pallas_call(
        pose_loss_kernel,
        out_shape=jax.ShapeDtypeStruct((3,), jnp.float32),
        in_specs=[smem, smem,          # sx (1,), sq (1,)
                  vmem, vmem,          # pred_x (B,3), pred_q (B,4)
                  vmem, vmem],         # target_x (B,3), target_q (B,4)
        out_specs=smem,
    )(sx.astype(f32), sq.astype(f32),
      pred_x.astype(f32), pred_q.astype(f32),
      target_x.astype(f32), target_q.astype(f32))
    return out[0], out[1], out[2]


def pose_loss_ref(pred_x, pred_q, target_x, target_q, sx, sq):
    q_norm = jnp.maximum(jnp.linalg.norm(pred_q, axis=1, keepdims=True), 1e-12)
    q_n = pred_q / q_norm
    loss_x = jnp.mean(jnp.abs(pred_x - target_x))
    loss_q = jnp.mean(jnp.abs(q_n - target_q))
    loss = jnp.exp(-sx[0]) * loss_x + sx[0] + jnp.exp(-sq[0]) * loss_q + sq[0]
    return loss, loss_x, loss_q


if __name__ == "__main__":
    key = jax.random.PRNGKey(0)
    k1, k2, k3, k4 = jax.random.split(key, 4)

    B = 8  # batch of poses
    pred_x = jax.random.normal(k1, (B, 3), dtype=jnp.float32)     # translation
    pred_q = jax.random.normal(k2, (B, 4), dtype=jnp.float32)     # quaternion
    target_x = jax.random.normal(k3, (B, 3), dtype=jnp.float32)
    target_q = jax.random.normal(k4, (B, 4), dtype=jnp.float32)
    target_q = target_q / jnp.linalg.norm(target_q, axis=1, keepdims=True)

    # Deterministic parameter init matching pose_loss.__init__(device, sx=0.0, sq=0.0)
    sx = jnp.array([0.0], dtype=jnp.float32)
    sq = jnp.array([0.0], dtype=jnp.float32)

    loss, loss_x, loss_q = pose_loss_pallas(pred_x, pred_q, target_x, target_q, sx, sq)
    jax.block_until_ready(loss)

    ref_loss, ref_lx, ref_lq = pose_loss_ref(pred_x, pred_q, target_x, target_q, sx, sq)
    assert jnp.allclose(loss, ref_loss, atol=1e-5), (loss, ref_loss)
    assert jnp.allclose(loss_x, ref_lx, atol=1e-5), (loss_x, ref_lx)
    assert jnp.allclose(loss_q, ref_lq, atol=1e-5), (loss_q, ref_lq)

    print("KERNEL_OK")
</pallas_src>

<mosaic_0001>
module attributes {stable_mosaic.version = 11 : i64} {
  func.func @pose_loss_kernel(%arg0: memref<1xf32, #tpu.memory_space<smem>>, %arg1: memref<1xf32, #tpu.memory_space<smem>>, %arg2: memref<8x3xf32, #tpu.memory_space<vmem>>, %arg3: memref<8x4xf32, #tpu.memory_space<vmem>>, %arg4: memref<8x3xf32, #tpu.memory_space<vmem>>, %arg5: memref<8x4xf32, #tpu.memory_space<vmem>>, %arg6: memref<3xf32, #tpu.memory_space<smem>>) attributes {dimension_semantics = [], scalar_prefetch = 0 : i64, scratch_operands = 0 : i64, tpu.core_type = #tpu.core_type<tc>} {
    %c0 = arith.constant 0 : index
    %c0_0 = arith.constant 0 : index
    %0 = vector.load %arg2[%c0, %c0_0] : memref<8x3xf32, #tpu.memory_space<vmem>>, vector<8x3xf32>
    %c0_1 = arith.constant 0 : index
    %c0_2 = arith.constant 0 : index
    %1 = vector.load %arg3[%c0_1, %c0_2] : memref<8x4xf32, #tpu.memory_space<vmem>>, vector<8x4xf32>
    %c0_3 = arith.constant 0 : index
    %c0_4 = arith.constant 0 : index
    %2 = vector.load %arg4[%c0_3, %c0_4] : memref<8x3xf32, #tpu.memory_space<vmem>>, vector<8x3xf32>
    %c0_5 = arith.constant 0 : index
    %c0_6 = arith.constant 0 : index
    %3 = vector.load %arg5[%c0_5, %c0_6] : memref<8x4xf32, #tpu.memory_space<vmem>>, vector<8x4xf32>
    %4 = arith.mulf %1, %1 : vector<8x4xf32>
    %cst = arith.constant dense<0.000000e+00> : vector<8xf32>
    %5 = vector.multi_reduction <add>, %4, %cst [1] : vector<8x4xf32> to vector<8xf32>
    %6 = vector.shape_cast %5 : vector<8xf32> to vector<8x1xf32>
    %cst_7 = arith.constant 1.000000e-24 : f32
    %7 = vector.broadcast %cst_7 : f32 to vector<8x1xf32>
    %8 = arith.maximumf %6, %7 : vector<8x1xf32>
    %9 = math.rsqrt %8 : vector<8x1xf32>
    %10 = vector.broadcast %9 : vector<8x1xf32> to vector<8x4xf32>
    %11 = arith.mulf %1, %10 : vector<8x4xf32>
    %12 = arith.subf %0, %2 : vector<8x3xf32>
    %13 = math.absf %12 : vector<8x3xf32>
    %14 = vector.shape_cast %13 : vector<8x3xf32> to vector<1x8x3xf32>
    %cst_8 = arith.constant dense<0.000000e+00> : vector<1xf32>
    %15 = vector.multi_reduction <add>, %14, %cst_8 [1, 2] : vector<1x8x3xf32> to vector<1xf32>
    %16 = vector.shape_cast %15 : vector<1xf32> to vector<1x1x1xf32>
    %17 = vector.extract %16[0, 0, 0] : f32 from vector<1x1x1xf32>
    %cst_9 = arith.constant 0.0416666679 : f32
    %18 = arith.mulf %17, %cst_9 : f32
    %19 = arith.subf %11, %3 : vector<8x4xf32>
    %20 = math.absf %19 : vector<8x4xf32>
    %21 = vector.shape_cast %20 : vector<8x4xf32> to vector<1x8x4xf32>
    %cst_10 = arith.constant dense<0.000000e+00> : vector<1xf32>
    %22 = vector.multi_reduction <add>, %21, %cst_10 [1, 2] : vector<1x8x4xf32> to vector<1xf32>
    %23 = vector.shape_cast %22 : vector<1xf32> to vector<1x1x1xf32>
    %24 = vector.extract %23[0, 0, 0] : f32 from vector<1x1x1xf32>
    %cst_11 = arith.constant 3.125000e-02 : f32
    %25 = arith.mulf %24, %cst_11 : f32
    %c0_12 = arith.constant 0 : index
    %26 = memref.load %arg0[%c0_12] : memref<1xf32, #tpu.memory_space<smem>>
    %c0_13 = arith.constant 0 : index
    %27 = memref.load %arg1[%c0_13] : memref<1xf32, #tpu.memory_space<smem>>
    %28 = tpu.iota {dimensions = array<i32: 1>} : vector<1x2xi32>
    %c0_i32 = arith.constant 0 : i32
    %29 = vector.broadcast %c0_i32 : i32 to vector<1x2xi32>
    %30 = arith.cmpi eq, %28, %29 : vector<1x2xi32>
    %31 = vector.broadcast %26 : f32 to vector<1x2xf32>
    %32 = vector.broadcast %27 : f32 to vector<1x2xf32>
    %33 = arith.select %30, %31, %32 : vector<1x2xi1>, vector<1x2xf32>
    %c0_i32_14 = arith.constant 0 : i32
    %34 = vector.broadcast %c0_i32_14 : i32 to vector<1x2xi32>
    %35 = arith.cmpi eq, %28, %34 : vector<1x2xi32>
    %36 = vector.broadcast %18 : f32 to vector<1x2xf32>
    %37 = vector.broadcast %25 : f32 to vector<1x2xf32>
    %38 = arith.select %35, %36, %37 : vector<1x2xi1>, vector<1x2xf32>
    %cst_15 = arith.constant 0.000000e+00 : f32
    %39 = vector.broadcast %cst_15 : f32 to vector<1x2xf32>
    %40 = arith.subf %39, %33 : vector<1x2xf32>
    %41 = math.exp %40 : vector<1x2xf32>
    %42 = arith.mulf %41, %38 : vector<1x2xf32>
    %43 = arith.addf %42, %33 : vector<1x2xf32>
    %44 = vector.shape_cast %43 : vector<1x2xf32> to vector<1x1x2xf32>
    %cst_16 = arith.constant dense<0.000000e+00> : vector<1xf32>
    %45 = vector.multi_reduction <add>, %44, %cst_16 [1, 2] : vector<1x1x2xf32> to vector<1xf32>
    %46 = vector.shape_cast %45 : vector<1xf32> to vector<1x1x1xf32>
    %47 = vector.extract %46[0, 0, 0] : f32 from vector<1x1x1xf32>
    %c0_17 = arith.constant 0 : index
    %48 = memref.load %arg6[%c0_17] : memref<3xf32, #tpu.memory_space<smem>>
    memref.store %47, %arg6[%c0_17] : memref<3xf32, #tpu.memory_space<smem>>
    %c1 = arith.constant 1 : index
    %49 = memref.load %arg6[%c1] : memref<3xf32, #tpu.memory_space<smem>>
    memref.store %18, %arg6[%c1] : memref<3xf32, #tpu.memory_space<smem>>
    %c2 = arith.constant 2 : index
    %50 = memref.load %arg6[%c2] : memref<3xf32, #tpu.memory_space<smem>>
    memref.store %25, %arg6[%c2] : memref<3xf32, #tpu.memory_space<smem>>
    return
  }
}

</mosaic_0001>

<bundles_post_ra>
// kernel: tpu_custom_call.1
= control target key start
LH: loop header
LB: loop body
LE: loop exit
PB: predicated region body
PF: predicated region fallthrough
CT: control target
= control target key end

     0   :  { %vm31_vm0 = vcmask 31744   ;;  %s206_s0 = inlined_call_operand.<no memory space> [shape: f32[1], index: 0, kind: input, shape index: {}]   ;;  %s207_s1 = inlined_call_operand.<no memory space> [shape: f32[1], index: 1, kind: input, shape index: {}]   ;;  %s208_s2 = inlined_call_operand.vmem [shape: f32[8,3], index: 2, kind: input, shape index: {}]   ;;  %s209_s3 = inlined_call_operand.vmem [shape: f32[8,4], index: 3, kind: input, shape index: {}]   ;;  %s210_s4 = inlined_call_operand.vmem [shape: f32[8,3], index: 4, kind: input, shape index: {}]   ;;  %s211_s5 = inlined_call_operand.vmem [shape: f32[8,4], index: 5, kind: input, shape index: {}]   ;;  %s212_s6 = inlined_call_operand.hbm [shape: f32[3], index: 6, kind: output, shape index: {}]  }
   0x1   :  { %v27_v0 = vld [vmem:[%s209_s3] sm:$0xff] }
   0x2   :  { %13 = vsyncpa [#allocation5], 0  ;;  %v30_v1 = vmul.f32 %v27_v0, %v27_v0  ;;  %v26_v3 = vld [vmem:[%s208_s2] sm:$0xff]  ;;  %vm49_vm1 = vcmask 23552   ;;  %v76_v36 = vlaneseq  ;;  %v79_v38 = vstv %s206_s0  ;;  %s112_s9 = sshll.u32 %s212_s6, 4  ;;  %s147_s11 = smov [#allocation4]   ;;  %s113_s9 = int_to_ptr.hbm [resolvable:$true] %s112_s9 }
   0x3   :  { %v28_v4 = vld [vmem:[%s210_s4] sm:$0xff]  ;;  %v80_v39 = vstv %s207_s1  ;;  %vm90_vm6 = vcmask 8192  }
   0x4   :  { %v32_v2 = vsel %vm31_vm0, %v30_v1, 0.0  ;;  %v47_v5 = vsub.f32 %v26_v3, %v28_v4  ;;  %v29_v16 = vld [vmem:[%s211_s5] sm:$0xff]  ;;  %v77_v37 = vand.u32 127, %v76_v36 }
   0x5   :  { %33 = vadd.xlane.f32.xlu0 %v32_v2 }
   0x6   :  { %v48_v6 = vand.u32 2147483647, %v47_v5  ;;  %vm78_vm5 = vcmp.eq.s32.totalorder %v77_v37, 0 }
   0x7   :  { %v81_v40 = vsel %vm78_vm5, %v79_v38, %v80_v39 }
   0x8   :  { %v50_v7 = vsel %vm49_vm1, %v48_v6, 0.0  ;;  %v85_v41 = vsub.f32 0.0, %v81_v40 }
   0xa   :  { %v86_v42 = vmul.f32 1.442695, %v85_v41 }
   0xd   :  { %51 = vadd.xlane.f32.xlu0 %v50_v7 }
  0x78   :  { %v34_v8 = vpop.xlane.xlu0 %33 }
  0x79   :  { %v35_v9 = vmax.f32 %v34_v8, 1e-24 }
  0x7b   :  { %129 = vrsqrt.f32 %v35_v9  ;;  %vm42_vm3 = vweird.f32 %v35_v9 }
  0x7c   :  { %131 = vpow2.f32 %v86_v42 }
  0x80   :  { %v52_v22 = vpop.xlane.xlu0 %51 }
  0x81   :  { %v130_v10 = vpop.eup %129  ;;  %v53_v23 = vrot.slane %v52_v22, 4 }
  0x82   :  { %v37_v11 = vmul.f32 %v130_v10, %v35_v9  ;;  %vm43_vm2 = vweird.f32 %v130_v10  ;;  %v132_v43 = vpop.eup %131 }
  0x83   :  { %vm44_vm4 = vmor %vm42_vm3, %vm43_vm2  ;;  %v54_v24 = vadd.f32 %v53_v23, %v52_v22 }
  0x84   :  { %v38_v12 = vmul.f32 %v130_v10, %v37_v11 }
  0x85   :  { %v55_v25 = vrot.slane %v54_v24, 2 }
  0x86   :  { %v39_v13 = vmul.f32 0.5, %v38_v12 }
  0x87   :  { %v56_v26 = vadd.f32 %v55_v25, %v54_v24 }
  0x88   :  { %v40_v14 = vsub.f32 1.5, %v39_v13 }
  0x89   :  { %v57_v27 = vrot.slane %v56_v26, 1 }
  0x8a   :  { %v41_v15 = vmul.f32 %v130_v10, %v40_v14 }
  0x8b   :  { %v58_v28 = vadd.f32 %v57_v27, %v56_v26 }
  0x8c   :  { %v45_v17 = vsel %vm44_vm4, %v130_v10, %v41_v15 }
  0x8d   :  { %v46_v18 = vmul.f32 %v45_v17, %v27_v0  ;;  %122 = vpush %v58_v28 }
  0x8f   :  { %v61_v19 = vsub.f32 %v46_v18, %v29_v16 }
  0x91   :  { %v62_v20 = vand.u32 2147483647, %v61_v19 }
  0x93   :  { %v63_v21 = vsel %vm31_vm0, %v62_v20, 0.0 }
  0x94   :  { %64 = vadd.xlane.f32.xlu1 %v63_v21 }
  0xbe   :  { %s123_s4 = spop %122 }
  0xbf   :  { %s60_s5 = smul.f32 0.041666668, %s123_s4 }
  0xc1   :  { %104 = sst [smem:[#allocation4 + $0x1]] %s60_s5  ;;  %v82_v44 = vstv %s60_s5 }
 0x107   :  { %v65_v29 = vpop.xlane.xlu1 %64 }
 0x108   :  { %v66_v30 = vrot.slane %v65_v29, 4 }
 0x10a   :  { %v67_v31 = vadd.f32 %v66_v30, %v65_v29 }
 0x10c   :  { %v68_v32 = vrot.slane %v67_v31, 2 }
 0x10e   :  { %v69_v33 = vadd.f32 %v68_v32, %v67_v31 }
 0x110   :  { %v70_v34 = vrot.slane %v69_v33, 1 }
 0x112   :  { %v71_v35 = vadd.f32 %v70_v34, %v69_v33 }
 0x114   :  { %124 = vpush %v71_v35 }
 0x145   :  { %s125_s7 = spop %124 }
 0x146   :  { %s73_s8 = smul.f32 0.03125, %s125_s7 }
 0x148   :  { %v83_v45 = vstv %s73_s8  ;;  %106 = sst [smem:[#allocation4 + $0x2]] %s73_s8 }
 0x149   :  { %v84_v46 = vsel %vm78_vm5, %v82_v44, %v83_v45 }
 0x14a   :  { %v88_v47 = vmul.f32 %v132_v43, %v84_v46 }
 0x14c   :  { %v89_v48 = vadd.f32 %v88_v47, %v81_v40 }
 0x14e   :  { %v91_v49 = vsel %vm90_vm6, %v89_v48, 0.0 }
 0x14f   :  { %92 = vadd.xlane.f32.xlu1 %v91_v49 }
 0x1c2   :  { %v93_v50 = vpop.xlane.xlu1 %92 }
 0x1c3   :  { %v94_v51 = vrot.slane %v93_v50, 4 }
 0x1c5   :  { %v95_v52 = vadd.f32 %v94_v51, %v93_v50 }
 0x1c7   :  { %v96_v53 = vrot.slane %v95_v52, 2 }
 0x1c9   :  { %v97_v54 = vadd.f32 %v96_v53, %v95_v52 }
 0x1cb   :  { %v98_v55 = vrot.slane %v97_v54, 1 }
 0x1cd   :  { %v99_v56 = vadd.f32 %v98_v55, %v97_v54 }
 0x1cf   :  { %126 = vpush %v99_v56 }
 0x200   :  { %s127_s10 = spop %126 }
 0x201   :  { %102 = sst [smem:[#allocation4]] %s127_s10 }
 0x202   :  { %115 = dma.smem_to_hbm %s147_s11, 16, %s113_s9, [#allocation5]  }
 0x203   :  { %145 = dma.done.wait [#allocation5], 16  }
 0x204   :  { %146 = vsyncadd [#allocation5], 4294967280 }
 0x205   :  { %120 = sfence }
 0x206   :  { %121 = vsyncpa [#allocation5], 1 }

</bundles_post_ra>
